<compile_context>
chip_gen: v7x
topology: tpu7x:2x2x1
jax: 0.10.0
libtpu: 0.0.40
codegen_flags: <defaults>
</compile_context>

<pallas_src>
import jax
import jax.numpy as jnp
from jax import lax
from jax.experimental import pallas as pl
from jax.experimental.pallas import tpu as pltpu

CP = 8   # channels padded up to one f32 sublane tile (8)


def _round_up(x, m):
    return ((x + m - 1) // m) * m


# ---------------------- roll-direction probe (one tiny call) -----------------
_ROLL_SIGN = None


def _roll_convention():
    """+1 if pltpu.roll matches jnp.roll (out[i] = in[(i-shift) % N]), else -1."""
    global _ROLL_SIGN
    if _ROLL_SIGN is None:
        def k(x_ref, o_ref):
            o_ref[...] = pltpu.roll(x_ref[...], 1, axis=1)

        x = jnp.tile(jnp.arange(128, dtype=jnp.float32)[None, :], (8, 1))
        y = pl.pallas_call(
            k, out_shape=jax.ShapeDtypeStruct((8, 128), jnp.float32))(x)
        _ROLL_SIGN = 1 if float(y[0, 1]) == 0.0 else -1
    return _ROLL_SIGN


# --------------------------- wrapper-side packing ----------------------------
def _make_tap_masks(H, W, HWp):
    """(9, HWp) f32 validity masks for the 9 taps of a 3x3 'same' conv.

    Zeros in the lane-pad region [H*W, HWp) so padded lanes never contribute.
    """
    h = jnp.arange(H)
    w = jnp.arange(W)
    rows = []
    for dy in range(3):
        for dx in range(3):
            vh = ((h + dy - 1) >= 0) & ((h + dy - 1) < H)
            vw = ((w + dx - 1) >= 0) & ((w + dx - 1) < W)
            m = (vh[:, None] & vw[None, :]).reshape(H * W).astype(jnp.float32)
            rows.append(jnp.pad(m, (0, HWp - H * W)))
    return jnp.stack(rows, axis=0)


def _pack_conv_weight(w_hwio, cout_pad):
    """HWIO (3,3,Cin,Cout) -> matmul LHS (cout_pad, 9*CP); column = t*CP + ci."""
    kh, kw, cin, cout = w_hwio.shape
    wt = jnp.transpose(w_hwio, (3, 0, 1, 2))                      # (cout,3,3,cin)
    wt = jnp.pad(wt, ((0, cout_pad - cout), (0, 0), (0, 0), (0, CP - cin)))
    return wt.reshape(cout_pad, kh * kw * CP)


def _pack_col(v, n_pad):
    v = v.reshape(-1, 1)
    return jnp.pad(v, ((0, n_pad - v.shape[0]), (0, 0)))


# ------------------------------- Pallas kernel -------------------------------
def _conv3x3_roll(x, w_mat, m, W, HWp, roll_sign):
    """3x3 'same' conv on a lane-dense (CP, HWp) slab.

    x: (CP, HWp) activation, channels in sublanes, flat h*W+w in lanes.
    w_mat: (Cout_pad, 9*CP) packed weights.   m: (9, HWp) 0/1 tap masks.
    The nine tap operands are built with pltpu.roll (XLU) + mask multiply and
    stacked along sublanes as a value -> one (Cout, 72) @ (72, HWp) MXU matmul,
    no scratch stores.  Valid output lanes with a valid tap always read lanes
    in [0, H*W) of the same slab, so wrap / pad garbage only lands on masked
    (or pad) positions.
    """
    pieces = []
    for dy in range(3):
        for dx in range(3):
            t = dy * 3 + dx
            s = (dy - 1) * W + (dx - 1)
            if s == 0:
                pieces.append(x)                      # centre tap: always valid
            else:
                shifted = pltpu.roll(x, (-roll_sign * s) % HWp, axis=1)
                pieces.append(shifted * m[t:t + 1, :])
    col = jnp.concatenate(pieces, axis=0)             # (9*CP, HWp) value
    return jnp.dot(w_mat, col, preferred_element_type=jnp.float32)


def _make_center_head_kernel(spatial, offs, hwpads, roll_sign):
    def kernel(x_ref, m_ref, w1_ref, s1_ref, t1_ref, w2_ref, s2_ref, t2_ref,
               w3_ref, b3_ref, o_ref):
        for l, (H, W) in enumerate(spatial):
            off, HWp = offs[l], hwpads[l]
            x = x_ref[0, :, off:off + HWp]            # (CP, HWp), lane-aligned
            m = m_ref[:, off:off + HWp]               # (9, HWp)
            # conv1 (no bias) + folded BN(eval) + ReLU
            a = _conv3x3_roll(x, w1_ref[l], m, W, HWp, roll_sign)
            a = jnp.maximum(a * s1_ref[l] + t1_ref[l], 0.0)
            # conv2 (no bias) + folded BN(eval) + ReLU
            a = _conv3x3_roll(a, w2_ref[l], m, W, HWp, roll_sign)
            a = jnp.maximum(a * s2_ref[l] + t2_ref[l], 0.0)
            # conv3 (+bias), 5 real output channels (rows 5:8 of the pad are 0)
            a = _conv3x3_roll(a, w3_ref[l], m, W, HWp, roll_sign)
            a = a + b3_ref[l]
            # eval-mode sigmoid on heatmap row only; two direct lane-dense stores
            o_ref[0, 0:1, off:off + HWp] = jax.nn.sigmoid(a[0:1, :])
            o_ref[0, 1:5, off:off + HWp] = a[1:5, :]
    return kernel


def center_head_pallas(x_slab, masks, packed, spatial, offs, hwpads, B, roll_sign):
    P = int(x_slab.shape[-1])
    in_specs = (
        [pl.BlockSpec((1, CP, P), lambda b: (b, 0, 0)),
         pl.BlockSpec((9, P), lambda b: (0, 0))]
        + [pl.BlockSpec(p.shape, lambda b: (0, 0, 0)) for p in packed]
    )
    out_shape = jax.ShapeDtypeStruct((B, 5, P), jnp.float32)
    out_specs = pl.BlockSpec((1, 5, P), lambda b: (b, 0, 0))

    return pl.pallas_call(
        _make_center_head_kernel(spatial, offs, hwpads, roll_sign),
        out_shape=out_shape,
        grid_spec=pltpu.PrefetchScalarGridSpec(
            num_scalar_prefetch=0,
            grid=(B,),
            in_specs=in_specs,
            out_specs=out_specs,
        ),
        compiler_params=pltpu.CompilerParams(
            dimension_semantics=("parallel",)),        # v7x: 2 TCs, 2 iterations
    )(x_slab, masks, *packed)


# --------------------------------- forward -----------------------------------
def center_head_forward(features_nchw, branch_params):
    """features_nchw: list of (B, C, H, W) arrays (PyTorch convention)."""
    assert len(features_nchw) == len(branch_params)
    spatial = [(int(x.shape[2]), int(x.shape[3])) for x in features_nchw]
    B, C = int(features_nchw[0].shape[0]), int(features_nchw[0].shape[1])
    assert C <= CP

    hwpads = [_round_up(h * w, 128) for h, w in spatial]
    offs = [0]
    for hwp in hwpads[:-1]:
        offs.append(offs[-1] + hwp)

    x_segs, m_segs = [], []
    for x, (h, w), hwp in zip(features_nchw, spatial, hwpads):
        xf = x.reshape(B, C, h * w)                       # NCHW flatten(2)
        x_segs.append(jnp.pad(xf, ((0, 0), (0, CP - C), (0, hwp - h * w))))
        m_segs.append(_make_tap_masks(h, w, hwp))
    x_slab = jnp.concatenate(x_segs, axis=2)              # (B, CP, P)
    masks = jnp.concatenate(m_segs, axis=1)               # (9, P)

    per_level = []
    for (w1, s1, b1, w2, s2, b2, w3, b3) in branch_params:
        per_level.append((
            _pack_conv_weight(w1, CP), _pack_col(s1, CP), _pack_col(b1, CP),
            _pack_conv_weight(w2, CP), _pack_col(s2, CP), _pack_col(b2, CP),
            _pack_conv_weight(w3, CP), _pack_col(b3, CP)))
    packed = tuple(jnp.stack([lvl[i] for lvl in per_level], axis=0)
                   for i in range(8))

    roll_sign = _roll_convention()
    out = center_head_pallas(x_slab, masks, packed, spatial, offs, hwpads,
                             B, roll_sign)                 # (B, 5, P)

    heatmap, size, offset = [], [], []
    for (h, w), off in zip(spatial, offs):
        o = out[:, :, off:off + h * w]                     # drop lane padding
        heatmap.append(jnp.transpose(o[:, 0:1, :], (0, 2, 1)))
        size.append(jnp.transpose(o[:, 1:3, :], (0, 2, 1)))
        offset.append(jnp.transpose(o[:, 3:5, :], (0, 2, 1)))
    return {
        'heatmap': jnp.concatenate(heatmap, axis=1),
        'size': jnp.concatenate(size, axis=1),
        'offset': jnp.concatenate(offset, axis=1),
    }


# ---------- deterministic parameter init (synthetic, not a checkpoint) -------
def make_branch_params(key, C, eps=1e-5):
    ks = jax.random.split(key, 12)

    def bn_fold(kg, kb, km, kv):
        gamma = 1.0 + 0.1 * jax.random.normal(kg, (C,), jnp.float32)
        beta = 0.1 * jax.random.normal(kb, (C,), jnp.float32)
        mean = 0.1 * jax.random.normal(km, (C,), jnp.float32)
        var = jax.random.uniform(kv, (C,), jnp.float32, 0.5, 1.5)
        scale = gamma * lax.rsqrt(var + eps)
        shift = beta - mean * scale
        return scale, shift

    # conv weights stored HWIO: (3, 3, Cin, Cout)
    w1 = 0.2 * jax.random.normal(ks[0], (3, 3, C, C), jnp.float32)
    s1, b1 = bn_fold(ks[1], ks[2], ks[3], ks[4])
    w2 = 0.2 * jax.random.normal(ks[5], (3, 3, C, C), jnp.float32)
    s2, b2 = bn_fold(ks[6], ks[7], ks[8], ks[9])
    w3 = 0.2 * jax.random.normal(ks[10], (3, 3, C, 5), jnp.float32)
    b3 = 0.1 * jax.random.normal(ks[11], (5,), jnp.float32)
    return (w1, s1, b1, w2, s2, b2, w3, b3)


# ---------- pure-JAX reference (for correctness check) -----------------------
def _conv_ref(x, w):
    return lax.conv_general_dilated(
        x, w, window_strides=(1, 1), padding='SAME',
        dimension_numbers=('NHWC', 'HWIO', 'NHWC'))


def center_head_ref(features_nchw, branch_params):
    heatmap, size, offset = [], [], []
    for x, (w1, s1, b1, w2, s2, b2, w3, b3) in zip(features_nchw, branch_params):
        a = jnp.transpose(x, (0, 2, 3, 1))
        a = jnp.maximum(_conv_ref(a, w1) * s1 + b1, 0.0)
        a = jnp.maximum(_conv_ref(a, w2) * s2 + b2, 0.0)
        a = _conv_ref(a, w3) + b3
        B, H, W, _ = a.shape
        a = a.reshape(B, H * W, 5)
        heatmap.append(a[:, :, 0:1])
        size.append(a[:, :, 1:3])
        offset.append(a[:, :, 3:5])
    return {
        'heatmap': jax.nn.sigmoid(jnp.concatenate(heatmap, axis=1)),
        'size': jnp.concatenate(size, axis=1),
        'offset': jnp.concatenate(offset, axis=1),
    }


if __name__ == "__main__":
    key = jax.random.PRNGKey(0)
    B, C = 2, 4
    feature_num = 3
    spatial = [(16, 16), (8, 8), (4, 4)]          # 3 FPN-like feature levels

    keys = jax.random.split(key, feature_num + 1)
    features = [jax.random.normal(keys[i], (B, C, h, w), jnp.float32)
                for i, (h, w) in enumerate(spatial)]
    branch_params = [make_branch_params(jax.random.fold_in(keys[-1], i), C)
                     for i in range(feature_num)]

    out = center_head_forward(features, branch_params)
    out = jax.tree_util.tree_map(jax.block_until_ready, out)

    ref = center_head_ref(features, branch_params)
    total_hw = sum(h * w for h, w in spatial)
    assert out['heatmap'].shape == (B, total_hw, 1)
    assert out['size'].shape == (B, total_hw, 2)
    assert out['offset'].shape == (B, total_hw, 2)
    for k in ('heatmap', 'size', 'offset'):
        err = float(jnp.max(jnp.abs(out[k] - ref[k])))
        assert err < 5e-4, (k, err)

    # TODO(synk): BatchNorm training-mode batch statistics (and running-stat
    # updates) are not implemented; BN is folded into eval-mode scale/shift.
    # bf16 im2col/weights (v6e/v7x suggestion) intentionally not used to keep
    # f32 numerics of the reference module within the 5e-4 tolerance.
    print("KERNEL_OK")
</pallas_src>

<mosaic_0001>
module attributes {stable_mosaic.version = 11 : i64} {
  func.func @k(%arg0: memref<8x128xf32, #tpu.memory_space<vmem>>, %arg1: memref<8x128xf32, #tpu.memory_space<vmem>>) attributes {dimension_semantics = [], scalar_prefetch = 0 : i64, scratch_operands = 0 : i64, tpu.core_type = #tpu.core_type<tc>} {
    %c0 = arith.constant 0 : index
    %c0_0 = arith.constant 0 : index
    %0 = vector.load %arg0[%c0, %c0_0] : memref<8x128xf32, #tpu.memory_space<vmem>>, vector<8x128xf32>
    %c1_i32 = arith.constant 1 : i32
    %1 = tpu.dynamic_rotate %0 by %c1_i32 dim 1 : vector<8x128xf32>, i32 -> vector<8x128xf32>
    %c0_1 = arith.constant 0 : index
    %c0_2 = arith.constant 0 : index
    %2 = vector.load %arg1[%c0_1, %c0_2] : memref<8x128xf32, #tpu.memory_space<vmem>>, vector<8x128xf32>
    tpu.vector_store %arg1[%c0_1, %c0_2], %1 {strides = array<i32>} : memref<8x128xf32, #tpu.memory_space<vmem>>, vector<8x128xf32>,
    return
  }
}

</mosaic_0001>

<bundles_post_ra>
// kernel: tpu_custom_call.1
= control target key start
LH: loop header
LB: loop body
LE: loop exit
PB: predicated region body
PF: predicated region fallthrough
CT: control target
= control target key end

     0   :  { %6 = vsyncpa [#allocation3], 0  ;;  %s128_s0 = inlined_call_operand.hbm [shape: f32[8,128], index: 0, kind: input, shape index: {}]   ;;  %s129_s1 = inlined_call_operand.hbm [shape: f32[8,128], index: 1, kind: output, shape index: {}]  }
   0x1   :  { %7 = vsyncpa [#allocation4], 0  ;;  %s91_s6 = smov [#allocation2]   ;;  %s43_s10 = scalar_lea.hbm %s128_s0, 128 }
   0x2   :  { %s14_s7 = sshll.u32 %s91_s6, 4  ;;  %p44_p0 = scmp.ne.s32.totalorder %s128_s0, %s43_s10  ;;  %s15_s7 = int_to_ptr.vmem [resolvable:$true] %s14_s7 }
   0x3   :  { %p47_p1 = scmp.lt.u32.totalorder %s43_s10, %s128_s0 }
   0x5   :  { %p49_p2 = pnand %p47_p1, %p44_p0 }
   0x7   :  { %52 = shalt.err (!%p49_p2)
}
   0x8   :  { %s53_s15 = scalar_lea.vmem %s15_s7, 128  ;;  %p58_p4 = scmp.lt.s32.totalorder %s15_s7, %s15_s7 }
   0x9   :  { %p54_p3 = scmp.ne.s32.totalorder %s15_s7, %s53_s15  ;;  %p59_p5 = scmp.lt.s32.totalorder %s53_s15, %s53_s15 }
   0xb   :  { %p60_p6 = por %p59_p5, %p58_p4 }
   0xd   :  { %p61_p7 = pnand %p60_p6, %p54_p3 }
   0xf   :  { %64 = shalt.err (!%p61_p7)
}
  0x10   :  { %17 = dma.hbm_to_vmem [thread:$0]  %s128_s0, 128, %s15_s7, [#allocation3]  }
  0x11   :  { %87 = dma.done.wait [#allocation3], 128  }
  0x12   :  { %88 = vsyncadd [#allocation3], 4294967168  ;;  %v21_v0 = vld [vmem:[#allocation2] sm:$0xff]  ;;  %s92_s18 = smov 1   ;;  %s93_s19 = smov [#allocation5]  }
  0x13   :  { %22 = vrot.lane.b32.xlu0 %v21_v0, %s92_s18  ;;  %s31_s20 = sshll.u32 %s93_s19, 4  ;;  %s32_s20 = int_to_ptr.vmem [resolvable:$true] %s31_s20 }
  0x14   :  { %s65_s21 = scalar_lea.vmem %s32_s20, 128  ;;  %p70_p9 = scmp.lt.s32.totalorder %s32_s20, %s32_s20 }
  0x15   :  { %p66_p8 = scmp.ne.s32.totalorder %s32_s20, %s65_s21  ;;  %p71_p10 = scmp.lt.s32.totalorder %s65_s21, %s65_s21 }
  0x17   :  { %p72_p11 = por %p71_p10, %p70_p9 }
  0x19   :  { %p73_p12 = pnand %p72_p11, %p66_p8 }
  0x85   :  { %v23_v1 = vpop.permute.xlu0 %22 }
  0x86   :  { %24 = vst [vmem:[#allocation5] sm:$0xff] %v23_v1 }
  0x87   :  { %76 = shalt.err (!%p73_p12)
}
  0x88   :  { %s77_s0 = scalar_lea.hbm %s129_s1, 128 }
  0x89   :  { %p78_p13 = scmp.ne.s32.totalorder %s129_s1, %s77_s0  ;;  %p81_p0 = scmp.lt.u32.totalorder %s77_s0, %s129_s1 }
  0x8b   :  { %p83_p1 = pnand %p81_p0, %p78_p13 }
  0x8d   :  { %86 = shalt.err (!%p83_p1)
}
  0x8e   :  { %34 = dma.vmem_to_hbm [thread:$0]  %s32_s20, 128, %s129_s1, [#allocation4]  }
  0x8f   :  { %89 = dma.done.wait [#allocation4], 128  }
  0x90   :  { %90 = vsyncadd [#allocation4], 4294967168 }
  0x91   :  { %38 = vsyncpa [#allocation3], 1 }
  0x92   :  { %39 = vsyncpa [#allocation4], 1 }

</bundles_post_ra>
